<compile_context>
chip_gen: v6e
topology: v6e:2x2x1
jax: 0.10.0
libtpu: 0.0.40
codegen_flags: <defaults>
</compile_context>

<pallas_src>
import jax
import jax.numpy as jnp
from jax.experimental import pallas as pl
from jax.experimental.pallas import tpu as pltpu


def _round_up(x, m):
    return ((x + m - 1) // m) * m


def _cdiv(a, b):
    return (a + b - 1) // b


def _vae_kernel(x_ref, w1_ref, b1_ref, wh_ref, bh_ref,
                eps_ref, wd1_ref, bd1_ref, wd2_ref, bd2_ref,
                recon_ref, mulv_ref):
    Zp = eps_ref.shape[-1]                       # lane-padded latent width (128)

    # ---- encoder trunk: Linear + ReLU (bf16 MXU, f32 accumulate) -----------
    x = x_ref[...].astype(jnp.bfloat16)
    h = jnp.dot(x, w1_ref[...], preferred_element_type=jnp.float32) + b1_ref[...]
    h = jnp.maximum(h, 0.0)

    # ---- fused heads, lane-aligned: [:, :Zp]=logvar (enc[-2]), [:, Zp:]=mu --
    hl = jnp.dot(h.astype(jnp.bfloat16), wh_ref[...],
                 preferred_element_type=jnp.float32) + bh_ref[...]
    logvar = hl[:, :Zp]
    mu = hl[:, Zp:]

    # ---- reparameterization: z = eps * exp(0.5*logvar) + mu (f32) ----------
    z = eps_ref[...] * jnp.exp(0.5 * logvar) + mu

    # ---- decoder: Linear + ReLU + Linear + Sigmoid --------------------------
    hd = jnp.dot(z.astype(jnp.bfloat16), wd1_ref[...],
                 preferred_element_type=jnp.float32) + bd1_ref[...]
    hd = jnp.maximum(hd, 0.0)
    out = jnp.dot(hd.astype(jnp.bfloat16), wd2_ref[...],
                  preferred_element_type=jnp.float32) + bd2_ref[...]

    # Sigmoid via EUP exp + approx reciprocal; f32 throughout (v5e-safe).
    recon_ref[...] = pl.reciprocal(1.0 + jnp.exp(-out), approx=True)
    mulv_ref[...] = hl           # packed [logvar | mu], lane-dense 256-wide slab


def vae_forward(x_nchw, params, eps, *, batch_tile=512):
    """Fused VAE forward.  x_nchw: (B, C, H, W) f32.  Returns (recon, mu, logvar)."""
    B, C, H, W = x_nchw.shape
    D = C * H * W
    x_flat = x_nchw.reshape(B, D)

    (w1, b1, wlv, blv, wmu, bmu, wd1, bd1, wd2, bd2) = params
    Hdim = w1.shape[1]
    Z = wmu.shape[1]
    Hp = _round_up(Hdim, 128)                    # lane-padded hidden width
    Zp = _round_up(Z, 128)                       # lane-padded latent width

    def pad2(a, rows, cols):
        return jnp.pad(a, ((0, rows - a.shape[0]), (0, cols - a.shape[1])))

    # Lane-padded resident weights (tiny -> pads cost nothing in HBM); bf16 for
    # the MXU, biases stay f32 (added to f32 accumulators).
    w1p = pad2(w1, D, Hp).astype(jnp.bfloat16)                         # (D, Hp)
    b1p = pad2(b1, 1, Hp)                                              # (1, Hp)
    # Fused heads: logvar (encoder[-2]) in lanes [0,Zp), mu (encoder[-1]) in [Zp,2Zp)
    whp = jnp.concatenate([pad2(wlv, Hp, Zp), pad2(wmu, Hp, Zp)],
                          axis=1).astype(jnp.bfloat16)                 # (Hp, 2Zp)
    bhp = jnp.concatenate([pad2(blv, 1, Zp), pad2(bmu, 1, Zp)], axis=1)  # (1, 2Zp)
    wd1p = pad2(wd1, Zp, Hp).astype(jnp.bfloat16)                      # (Zp, Hp)
    bd1p = pad2(bd1, 1, Hp)                                            # (1, Hp)
    wd2p = pad2(wd2, Hp, D).astype(jnp.bfloat16)                       # (Hp, D)

    # eps lane-padded to Zp (B x 128 f32 -> negligible). Padded latent columns
    # only ever hit zero rows of wd1p, so they never influence the decoder.
    eps_p = pad2(eps, B, Zp)

    # Batch tile: sublane-aligned; NO host-side batch padding — Pallas masks the
    # ragged last block (safe: every batch row is independent in each GEMM).
    TB = _round_up(min(batch_tile, _round_up(B, 8)), 8)
    # Keep >= 2 parallel tiles when B allows so v7x's 2 TensorCores both work.
    TB = max(8, min(TB, _round_up(_cdiv(B, 2), 8)))
    n_tiles = _cdiv(B, TB)

    in_specs = [
        pl.BlockSpec((TB, D), lambda i: (i, 0)),           # x      (batch-tiled)
        pl.BlockSpec((D, Hp), lambda i: (0, 0)),           # w1     (resident)
        pl.BlockSpec((1, Hp), lambda i: (0, 0)),           # b1
        pl.BlockSpec((Hp, 2 * Zp), lambda i: (0, 0)),      # wh (fused heads)
        pl.BlockSpec((1, 2 * Zp), lambda i: (0, 0)),       # bh
        pl.BlockSpec((TB, Zp), lambda i: (i, 0)),          # eps    (batch-tiled)
        pl.BlockSpec((Zp, Hp), lambda i: (0, 0)),          # wd1
        pl.BlockSpec((1, Hp), lambda i: (0, 0)),           # bd1
        pl.BlockSpec((Hp, D), lambda i: (0, 0)),           # wd2
        pl.BlockSpec((1, D), lambda i: (0, 0)),            # bd2
    ]
    out_specs = (
        pl.BlockSpec((TB, D), lambda i: (i, 0)),           # recon (flat)
        pl.BlockSpec((TB, 2 * Zp), lambda i: (i, 0)),      # packed [logvar | mu]
    )
    out_shapes = (
        jax.ShapeDtypeStruct((B, D), jnp.float32),
        jax.ShapeDtypeStruct((B, 2 * Zp), jnp.float32),
    )

    # Generation-aware VMEM limit: 3/4 of physical VMEM, capped at 96 MiB
    # (v7x: 48 MiB effective; v5e/v6e: 96 MiB).
    try:
        vmem_cap = pltpu.get_tpu_info().vmem_capacity_bytes
    except Exception:
        vmem_cap = 64 << 20
    vmem_limit = max(32 << 20, min(int(vmem_cap * 3 // 4), 96 << 20))

    weight_bytes = 2 * (w1p.size + whp.size + wd1p.size + wd2p.size) \
        + 4 * (b1p.size + bhp.size + bd1p.size + bd2.size)
    cost = pl.CostEstimate(
        flops=2 * B * (D * Hp + Hp * 2 * Zp + Zp * Hp + Hp * D),
        transcendentals=B * (Zp + 2 * D),                  # reparam exp + sigmoid exp/recip
        bytes_accessed=4 * B * (2 * D + 3 * Zp) + weight_bytes,
    )

    recon_flat, mulv = pl.pallas_call(
        _vae_kernel,
        out_shape=out_shapes,
        grid=(n_tiles,),
        in_specs=in_specs,
        out_specs=out_specs,
        compiler_params=pltpu.CompilerParams(
            dimension_semantics=("parallel",),
            vmem_limit_bytes=vmem_limit,
        ),
        cost_estimate=cost,
    )(x_flat, w1p, b1p, whp, bhp, eps_p, wd1p, bd1p, wd2p, bd2)

    recon = recon_flat.reshape(B, C, H, W)
    logvar = mulv[:, :Z]
    mu = mulv[:, Zp:Zp + Z]
    return recon, mu, logvar


def init_params(key, D, Hdim, Z):
    """Deterministic synthetic parameters (torch-Linear-style uniform init)."""
    ks = jax.random.split(key, 10)

    def lin(kw, kb, fan_in, fan_out):
        bound = 1.0 / jnp.sqrt(fan_in)
        w = jax.random.uniform(kw, (fan_in, fan_out), jnp.float32, -bound, bound)
        b = jax.random.uniform(kb, (1, fan_out), jnp.float32, -bound, bound)
        return w, b

    w1, b1 = lin(ks[0], ks[1], D, Hdim)       # encoder trunk Linear
    wlv, blv = lin(ks[2], ks[3], Hdim, Z)     # encoder[-2]: logvar head
    wmu, bmu = lin(ks[4], ks[5], Hdim, Z)     # encoder[-1]: mu head
    wd1, bd1 = lin(ks[6], ks[7], Z, Hdim)     # decoder Linear 1
    wd2, bd2 = lin(ks[8], ks[9], Hdim, D)     # decoder Linear 2
    return (w1, b1, wlv, blv, wmu, bmu, wd1, bd1, wd2, bd2)


def _vae_reference(x_nchw, params, eps):
    """Pure-JAX reference (f32) for a correctness sanity check."""
    B = x_nchw.shape[0]
    x = x_nchw.reshape(B, -1)
    (w1, b1, wlv, blv, wmu, bmu, wd1, bd1, wd2, bd2) = params
    h = jnp.maximum(x @ w1 + b1, 0.0)
    logvar = h @ wlv + blv
    mu = h @ wmu + bmu
    z = eps * jnp.exp(0.5 * logvar) + mu
    hd = jnp.maximum(z @ wd1 + bd1, 0.0)
    recon = jax.nn.sigmoid(hd @ wd2 + bd2)
    return recon.reshape(x_nchw.shape), mu, logvar


if __name__ == "__main__":
    key = jax.random.PRNGKey(0)
    k_x, k_p, k_eps = jax.random.split(key, 3)

    # Small shapes consistent with an NCHW image VAE.
    B, C, H, W = 2, 4, 16, 16
    D = C * H * W       # 1024
    HID = 32            # hidden width
    Z = 8               # latent dim

    x = jax.random.normal(k_x, (B, C, H, W), jnp.float32)
    params = init_params(k_p, D, HID, Z)
    eps = jax.random.normal(k_eps, (B, Z), jnp.float32)   # eps ~ N(0,1)

    recon, mu, logvar = vae_forward(x, params, eps)
    jax.block_until_ready((recon, mu, logvar))

    assert recon.shape == (B, C, H, W) and mu.shape == (B, Z) and logvar.shape == (B, Z)

    # Correctness check vs f32 reference (kernel matmuls run in bf16 on MXU).
    r_ref, mu_ref, lv_ref = _vae_reference(x, params, eps)
    assert float(jnp.max(jnp.abs(recon - r_ref))) < 3e-2
    assert float(jnp.max(jnp.abs(mu - mu_ref))) < 3e-2
    assert float(jnp.max(jnp.abs(logvar - lv_ref))) < 3e-2

    print("KERNEL_OK")
</pallas_src>

<mosaic_0001>
module attributes {stable_mosaic.version = 11 : i64} {
  func.func @_vae_kernel(%arg0: i32, %arg1: memref<8x1024xf32, #tpu.memory_space<vmem>>, %arg2: memref<1024x128xbf16, #tpu.memory_space<vmem>>, %arg3: memref<1x128xf32, #tpu.memory_space<vmem>>, %arg4: memref<128x256xbf16, #tpu.memory_space<vmem>>, %arg5: memref<1x256xf32, #tpu.memory_space<vmem>>, %arg6: memref<8x128xf32, #tpu.memory_space<vmem>>, %arg7: memref<128x128xbf16, #tpu.memory_space<vmem>>, %arg8: memref<1x128xf32, #tpu.memory_space<vmem>>, %arg9: memref<128x1024xbf16, #tpu.memory_space<vmem>>, %arg10: memref<1x1024xf32, #tpu.memory_space<vmem>>, %arg11: memref<8x1024xf32, #tpu.memory_space<vmem>>, %arg12: memref<8x256xf32, #tpu.memory_space<vmem>>) attributes {dimension_semantics = [#tpu.dimension_semantics<parallel>], iteration_bounds = array<i64: 1>, scalar_prefetch = 0 : i64, scratch_operands = 0 : i64, tpu.core_type = #tpu.core_type<tc>, window_params = [{transform_indices = @transform_0, window_bounds = array<i64: 8, 1024>}, {pipeline_mode = #tpu.pipeline_mode<synchronous>, transform_indices = @transform_1, window_bounds = array<i64: 1024, 128>}, {pipeline_mode = #tpu.pipeline_mode<synchronous>, transform_indices = @transform_2, window_bounds = array<i64: 1, 128>}, {pipeline_mode = #tpu.pipeline_mode<synchronous>, transform_indices = @transform_3, window_bounds = array<i64: 128, 256>}, {pipeline_mode = #tpu.pipeline_mode<synchronous>, transform_indices = @transform_4, window_bounds = array<i64: 1, 256>}, {transform_indices = @transform_5, window_bounds = array<i64: 8, 128>}, {pipeline_mode = #tpu.pipeline_mode<synchronous>, transform_indices = @transform_6, window_bounds = array<i64: 128, 128>}, {pipeline_mode = #tpu.pipeline_mode<synchronous>, transform_indices = @transform_7, window_bounds = array<i64: 1, 128>}, {pipeline_mode = #tpu.pipeline_mode<synchronous>, transform_indices = @transform_8, window_bounds = array<i64: 128, 1024>}, {pipeline_mode = #tpu.pipeline_mode<synchronous>, transform_indices = @transform_9, window_bounds = array<i64: 1, 1024>}, {transform_indices = @transform_10, window_bounds = array<i64: 8, 1024>}, {transform_indices = @transform_11, window_bounds = array<i64: 8, 256>}]} {
    %c0 = arith.constant 0 : index
    %c0_0 = arith.constant 0 : index
    %0 = vector.load %arg1[%c0, %c0_0] : memref<8x1024xf32, #tpu.memory_space<vmem>>, vector<8x1024xf32>
    %1 = arith.truncf %0 : vector<8x1024xf32> to vector<8x1024xbf16>
    %c0_1 = arith.constant 0 : index
    %c0_2 = arith.constant 0 : index
    %2 = vector.load %arg2[%c0_1, %c0_2] : memref<1024x128xbf16, #tpu.memory_space<vmem>>, vector<1024x128xbf16>
    %cst = arith.constant dense<0.000000e+00> : vector<8x128xf32>
    %3 = tpu.matmul %1, %2, %cst {dimension_numbers = #tpu.dot_dimension_numbers<[1], [0], [0], [1], [0, 0, 1, 1], [], []>} : vector<8x1024xbf16>, vector<1024x128xbf16>, vector<8x128xf32> -> vector<8x128xf32>
    %c0_3 = arith.constant 0 : index
    %c0_4 = arith.constant 0 : index
    %4 = vector.load %arg3[%c0_3, %c0_4] : memref<1x128xf32, #tpu.memory_space<vmem>>, vector<1x128xf32>
    %5 = vector.broadcast %4 : vector<1x128xf32> to vector<8x128xf32>
    %6 = arith.addf %3, %5 : vector<8x128xf32>
    %cst_5 = arith.constant 0.000000e+00 : f32
    %7 = vector.broadcast %cst_5 : f32 to vector<8x128xf32>
    %8 = arith.maximumf %6, %7 : vector<8x128xf32>
    %9 = arith.truncf %8 : vector<8x128xf32> to vector<8x128xbf16>
    %c0_6 = arith.constant 0 : index
    %c0_7 = arith.constant 0 : index
    %10 = vector.load %arg4[%c0_6, %c0_7] : memref<128x256xbf16, #tpu.memory_space<vmem>>, vector<128x256xbf16>
    %cst_8 = arith.constant dense<0.000000e+00> : vector<8x256xf32>
    %11 = tpu.matmul %9, %10, %cst_8 {dimension_numbers = #tpu.dot_dimension_numbers<[1], [0], [0], [1], [0, 0, 1, 1], [], []>} : vector<8x128xbf16>, vector<128x256xbf16>, vector<8x256xf32> -> vector<8x256xf32>
    %c0_9 = arith.constant 0 : index
    %c0_10 = arith.constant 0 : index
    %12 = vector.load %arg5[%c0_9, %c0_10] : memref<1x256xf32, #tpu.memory_space<vmem>>, vector<1x256xf32>
    %13 = vector.broadcast %12 : vector<1x256xf32> to vector<8x256xf32>
    %14 = arith.addf %11, %13 : vector<8x256xf32>
    %15 = vector.extract_strided_slice %14 {offsets = [0, 0], sizes = [8, 128], strides = [1, 1]} : vector<8x256xf32> to vector<8x128xf32>
    %16 = vector.extract_strided_slice %14 {offsets = [0, 128], sizes = [8, 128], strides = [1, 1]} : vector<8x256xf32> to vector<8x128xf32>
    %c0_11 = arith.constant 0 : index
    %c0_12 = arith.constant 0 : index
    %17 = vector.load %arg6[%c0_11, %c0_12] : memref<8x128xf32, #tpu.memory_space<vmem>>, vector<8x128xf32>
    %cst_13 = arith.constant 5.000000e-01 : f32
    %18 = vector.broadcast %cst_13 : f32 to vector<8x128xf32>
    %19 = arith.mulf %18, %15 : vector<8x128xf32>
    %20 = math.exp %19 : vector<8x128xf32>
    %21 = arith.mulf %17, %20 : vector<8x128xf32>
    %22 = arith.addf %21, %16 : vector<8x128xf32>
    %23 = arith.truncf %22 : vector<8x128xf32> to vector<8x128xbf16>
    %c0_14 = arith.constant 0 : index
    %c0_15 = arith.constant 0 : index
    %24 = vector.load %arg7[%c0_14, %c0_15] : memref<128x128xbf16, #tpu.memory_space<vmem>>, vector<128x128xbf16>
    %cst_16 = arith.constant dense<0.000000e+00> : vector<8x128xf32>
    %25 = tpu.matmul %23, %24, %cst_16 {dimension_numbers = #tpu.dot_dimension_numbers<[1], [0], [0], [1], [0, 0, 1, 1], [], []>} : vector<8x128xbf16>, vector<128x128xbf16>, vector<8x128xf32> -> vector<8x128xf32>
    %c0_17 = arith.constant 0 : index
    %c0_18 = arith.constant 0 : index
    %26 = vector.load %arg8[%c0_17, %c0_18] : memref<1x128xf32, #tpu.memory_space<vmem>>, vector<1x128xf32>
    %27 = vector.broadcast %26 : vector<1x128xf32> to vector<8x128xf32>
    %28 = arith.addf %25, %27 : vector<8x128xf32>
    %cst_19 = arith.constant 0.000000e+00 : f32
    %29 = vector.broadcast %cst_19 : f32 to vector<8x128xf32>
    %30 = arith.maximumf %28, %29 : vector<8x128xf32>
    %31 = arith.truncf %30 : vector<8x128xf32> to vector<8x128xbf16>
    %c0_20 = arith.constant 0 : index
    %c0_21 = arith.constant 0 : index
    %32 = vector.load %arg9[%c0_20, %c0_21] : memref<128x1024xbf16, #tpu.memory_space<vmem>>, vector<128x1024xbf16>
    %cst_22 = arith.constant dense<0.000000e+00> : vector<8x1024xf32>
    %33 = tpu.matmul %31, %32, %cst_22 {dimension_numbers = #tpu.dot_dimension_numbers<[1], [0], [0], [1], [0, 0, 1, 1], [], []>} : vector<8x128xbf16>, vector<128x1024xbf16>, vector<8x1024xf32> -> vector<8x1024xf32>
    %c0_23 = arith.constant 0 : index
    %c0_24 = arith.constant 0 : index
    %34 = vector.load %arg10[%c0_23, %c0_24] : memref<1x1024xf32, #tpu.memory_space<vmem>>, vector<1x1024xf32>
    %35 = vector.broadcast %34 : vector<1x1024xf32> to vector<8x1024xf32>
    %36 = arith.addf %33, %35 : vector<8x1024xf32>
    %cst_25 = arith.constant 0.000000e+00 : f32
    %37 = vector.broadcast %cst_25 : f32 to vector<8x1024xf32>
    %38 = arith.subf %37, %36 : vector<8x1024xf32>
    %39 = math.exp %38 : vector<8x1024xf32>
    %cst_26 = arith.constant 1.000000e+00 : f32
    %40 = vector.broadcast %cst_26 : f32 to vector<8x1024xf32>
    %41 = arith.addf %40, %39 : vector<8x1024xf32>
    %42 = tpu.reciprocal %41 {approx = true} : vector<8x1024xf32> -> vector<8x1024xf32>
    %c0_27 = arith.constant 0 : index
    %c0_28 = arith.constant 0 : index
    %43 = vector.load %arg11[%c0_27, %c0_28] : memref<8x1024xf32, #tpu.memory_space<vmem>>, vector<8x1024xf32>
    tpu.vector_store %arg11[%c0_27, %c0_28], %42 {strides = array<i32>} : memref<8x1024xf32, #tpu.memory_space<vmem>>, vector<8x1024xf32>,
    %c0_29 = arith.constant 0 : index
    %c0_30 = arith.constant 0 : index
    %44 = vector.load %arg12[%c0_29, %c0_30] : memref<8x256xf32, #tpu.memory_space<vmem>>, vector<8x256xf32>
    tpu.vector_store %arg12[%c0_29, %c0_30], %14 {strides = array<i32>} : memref<8x256xf32, #tpu.memory_space<vmem>>, vector<8x256xf32>,
    return
  }
  func.func @transform_0(%arg0: i32) -> (i32, i32) {
    %c0_i32 = arith.constant 0 : i32
    %c0_i32_0 = arith.constant 0 : i32
    return %arg0, %c0_i32 : i32, i32
  }
  func.func @transform_1(%arg0: i32) -> (i32, i32) {
    %c0_i32 = arith.constant 0 : i32
    %c0_i32_0 = arith.constant 0 : i32
    %c0_i32_1 = arith.constant 0 : i32
    return %c0_i32, %c0_i32_0 : i32, i32
  }
  func.func @transform_2(%arg0: i32) -> (i32, i32) {
    %c0_i32 = arith.constant 0 : i32
    %c0_i32_0 = arith.constant 0 : i32
    %c0_i32_1 = arith.constant 0 : i32
    return %c0_i32, %c0_i32_0 : i32, i32
  }
  func.func @transform_3(%arg0: i32) -> (i32, i32) {
    %c0_i32 = arith.constant 0 : i32
    %c0_i32_0 = arith.constant 0 : i32
    %c0_i32_1 = arith.constant 0 : i32
    return %c0_i32, %c0_i32_0 : i32, i32
  }
  func.func @transform_4(%arg0: i32) -> (i32, i32) {
    %c0_i32 = arith.constant 0 : i32
    %c0_i32_0 = arith.constant 0 : i32
    %c0_i32_1 = arith.constant 0 : i32
    return %c0_i32, %c0_i32_0 : i32, i32
  }
  func.func @transform_5(%arg0: i32) -> (i32, i32) {
    %c0_i32 = arith.constant 0 : i32
    %c0_i32_0 = arith.constant 0 : i32
    return %arg0, %c0_i32 : i32, i32
  }
  func.func @transform_6(%arg0: i32) -> (i32, i32) {
    %c0_i32 = arith.constant 0 : i32
    %c0_i32_0 = arith.constant 0 : i32
    %c0_i32_1 = arith.constant 0 : i32
    return %c0_i32, %c0_i32_0 : i32, i32
  }
  func.func @transform_7(%arg0: i32) -> (i32, i32) {
    %c0_i32 = arith.constant 0 : i32
    %c0_i32_0 = arith.constant 0 : i32
    %c0_i32_1 = arith.constant 0 : i32
    return %c0_i32, %c0_i32_0 : i32, i32
  }
  func.func @transform_8(%arg0: i32) -> (i32, i32) {
    %c0_i32 = arith.constant 0 : i32
    %c0_i32_0 = arith.constant 0 : i32
    %c0_i32_1 = arith.constant 0 : i32
    return %c0_i32, %c0_i32_0 : i32, i32
  }
  func.func @transform_9(%arg0: i32) -> (i32, i32) {
    %c0_i32 = arith.constant 0 : i32
    %c0_i32_0 = arith.constant 0 : i32
    %c0_i32_1 = arith.constant 0 : i32
    return %c0_i32, %c0_i32_0 : i32, i32
  }
  func.func @transform_10(%arg0: i32) -> (i32, i32) {
    %c0_i32 = arith.constant 0 : i32
    %c0_i32_0 = arith.constant 0 : i32
    return %arg0, %c0_i32 : i32, i32
  }
  func.func @transform_11(%arg0: i32) -> (i32, i32) {
    %c0_i32 = arith.constant 0 : i32
    %c0_i32_0 = arith.constant 0 : i32
    return %arg0, %c0_i32 : i32, i32
  }
}

</mosaic_0001>

<bundles_post_ra>
// kernel: tpu_custom_call.1
= control target key start
LH: loop header
LB: loop body
LE: loop exit
PB: predicated region body
PF: predicated region fallthrough
CT: control target
= control target key end

     0   :  { %17 = vsyncpa [#allocation3], 0  ;;  %s2726_s0 = inlined_call_operand.hbm [shape: f32[2,1024], index: 0, kind: input, shape index: {}]   ;;  %s2727_s1 = inlined_call_operand.hbm [shape: bf16[1024,128], index: 1, kind: input, shape index: {}]   ;;  %s2728_s2 = inlined_call_operand.vmem [shape: f32[1,128], index: 2, kind: input, shape index: {}]   ;;  %s2729_s3 = inlined_call_operand.hbm [shape: bf16[128,256], index: 3, kind: input, shape index: {}]   ;;  %s2730_s4 = inlined_call_operand.vmem [shape: f32[1,256], index: 4, kind: input, shape index: {}]   ;;  %s2731_s5 = inlined_call_operand.vmem [shape: f32[2,128], index: 5, kind: input, shape index: {}]   ;;  %s2732_s6 = inlined_call_operand.hbm [shape: bf16[128,128], index: 6, kind: input, shape index: {}]   ;;  %s2733_s7 = inlined_call_operand.vmem [shape: f32[1,128], index: 7, kind: input, shape index: {}]   ;;  %s2734_s8 = inlined_call_operand.hbm [shape: bf16[128,1024], index: 8, kind: input, shape index: {}]   ;;  %s2735_s9 = inlined_call_operand.vmem [shape: f32[1,1024], index: 9, kind: input, shape index: {}]   ;;  %s2736_s10 = inlined_call_operand.hbm [shape: f32[2,1024], index: 10, kind: output, shape index: {0}]   ;;  %s2737_s11 = inlined_call_operand.hbm [shape: f32[2,256], index: 11, kind: output, shape index: {1}]  }
   0x1   :  { %18 = vsyncpa [#allocation6], 0 }
   0x2   :  { %19 = vsyncpa [#allocation9], 0 }
   0x3   :  { %20 = vsyncpa [#allocation4], 0 }
   0x4   :  { %21 = vsyncpa [#allocation13], 0 }
   0x5   :  { %26 = vsyncadd [#allocation3], 768  ;;  %s2535_s17 = smov [#allocation5]  }
   0x6   :  { %s39_s18 = sshll.u32 %s2535_s17, 4  ;;  %s40_s18 = int_to_ptr.vmem [resolvable:$true] %s39_s18 }
   0x7   :  { %s2393_s19 = scalar_lea.vmem %s40_s18, 8192  ;;  %p2398_p1 = scmp.lt.s32.totalorder %s40_s18, %s40_s18 }
   0x8   :  { %p2394_p0 = scmp.ne.s32.totalorder %s40_s18, %s2393_s19  ;;  %p2399_p2 = scmp.lt.s32.totalorder %s2393_s19, %s2393_s19 }
   0xa   :  { %p2400_p3 = por %p2399_p2, %p2398_p1 }
   0xc   :  { %p2401_p4 = pnand %p2400_p3, %p2394_p0 }
   0xe   :  { %2404 = shalt.err (!%p2401_p4)
}
   0xf   :  { %s2536_s20 = smov 64   ;;  %s2537_s21 = smov 4  }
  0x10   :  { %45 = dma.hbm_to_vmem [thread:$0]  %s2727_s1, 8192, %s40_s18, [#allocation6], %s2536_s20, %s2536_s20, %s2537_s21  }
  0x11   :  { %s2538_s24 = smov [#allocation8]   ;;  %s2539_s26 = smov [#allocation2]  }
  0x12   :  { %s69_s25 = sshll.u32 %s2538_s24, 4  ;;  %s27_s27 = sshll.u32 %s2539_s26, 4  ;;  %s70_s25 = int_to_ptr.vmem [resolvable:$true] %s69_s25  ;;  %s28_s27 = int_to_ptr.vmem [resolvable:$true] %s27_s27 }
  0x13   :  { %s2413_s28 = scalar_lea.vmem %s70_s25, 1024  ;;  %p2418_p6 = scmp.lt.s32.totalorder %s70_s25, %s70_s25 }
  0x14   :  { %p2414_p5 = scmp.ne.s32.totalorder %s70_s25, %s2413_s28  ;;  %p2419_p7 = scmp.lt.s32.totalorder %s2413_s28, %s2413_s28 }
  0x16   :  { %p2420_p8 = por %p2419_p7, %p2418_p6 }
  0x18   :  { %p2421_p9 = pnand %p2420_p8, %p2414_p5 }
  0x1a   :  { %2424 = shalt.err (!%p2421_p9)
}
  0x1b   :  { %75 = dma.hbm_to_vmem [thread:$0]  %s2732_s6, 1024, %s70_s25, [#allocation9], %s2536_s20, %s2536_s20, %s2537_s21  }
  0x1c   :  { %s2433_s1 = scalar_lea.vmem %s28_s27, 256  ;;  %s2437_s12 = scalar_lea.vmem %s28_s27, 1024 }
  0x1d   :  { %p2434_p10 = scmp.ne.s32.totalorder %s28_s27, %s2433_s1  ;;  %p2438_p11 = scmp.lt.s32.totalorder %s28_s27, %s28_s27 }
  0x1e   :  { %p2439_p12 = scmp.lt.s32.totalorder %s2437_s12, %s2433_s1 }
  0x20   :  { %p2440_p13 = por %p2439_p12, %p2438_p11 }
  0x22   :  { %p2441_p0 = pnand %p2440_p13, %p2434_p10 }
  0x24   :  { %2444 = shalt.err (!%p2441_p0)
}
  0x25   :  { %s2540_s13 = smov 256   ;;  %s2541_s14 = smov 16  }
  0x26   :  { %33 = dma.hbm_to_vmem [thread:$0]  %s2726_s0, 256, %s28_s27, [#allocation3], %s2540_s13, %s2540_s13, %s2541_s14  }
  0x27   :  { %s2542_s17 = smov [#allocation7]  }
  0x28   :  { %s53_s6 = sshll.u32 %s2542_s17, 4  ;;  %s54_s6 = int_to_ptr.vmem [resolvable:$true] %s53_s6 }
  0x29   :  { %s2453_s18 = scalar_lea.vmem %s54_s6, 2048  ;;  %p2458_p2 = scmp.lt.s32.totalorder %s54_s6, %s54_s6 }
  0x2a   :  { %p2454_p1 = scmp.ne.s32.totalorder %s54_s6, %s2453_s18  ;;  %p2459_p3 = scmp.lt.s32.totalorder %s2453_s18, %s2453_s18 }
  0x2c   :  { %p2460_p4 = por %p2459_p3, %p2458_p2 }
  0x2e   :  { %p2461_p5 = pnand %p2460_p4, %p2454_p1 }
  0x30   :  { %2464 = shalt.err (!%p2461_p5)
}
  0x31   :  { %s2543_s19 = smov 128   ;;  %s2544_s22 = smov 8  }
  0x32   :  { %59 = dma.hbm_to_vmem [thread:$0]  %s2729_s3, 2048, %s54_s6, [#allocation6], %s2543_s19, %s2543_s19, %s2544_s22  }
  0x33   :  { %s2545_s25 = smov [#allocation10]  }
  0x34   :  { %s83_s26 = sshll.u32 %s2545_s25, 4  ;;  %s84_s26 = int_to_ptr.vmem [resolvable:$true] %s83_s26 }
  0x35   :  { %s2473_s0 = scalar_lea.vmem %s84_s26, 8192  ;;  %p2478_p7 = scmp.lt.s32.totalorder %s84_s26, %s84_s26 }
  0x36   :  { %p2474_p6 = scmp.ne.s32.totalorder %s84_s26, %s2473_s0  ;;  %p2479_p8 = scmp.lt.s32.totalorder %s2473_s0, %s2473_s0 }
  0x38   :  { %p2480_p9 = por %p2479_p8, %p2478_p7 }
  0x3a   :  { %p2481_p10 = pnand %p2480_p9, %p2474_p6 }
  0x3c   :  { %2484 = shalt.err (!%p2481_p10)
}
  0x3d   :  { %s2546_s27 = smov 512   ;;  %s2547_s28 = smov 32  }
  0x3e   :  { %89 = dma.hbm_to_vmem [thread:$0]  %s2734_s8, 8192, %s84_s26, [#allocation9], %s2546_s27, %s2546_s27, %s2547_s28  }
  0x3f   :  { %2525 = dma.done.wait [#allocation3], 1024  }
  0x40   :  { %2526 = vsyncadd [#allocation3], 4294966272 }
  0x41   :  { %2527 = dma.done.wait [#allocation6], 10240  }
  0x42   :  { %2528 = vsyncadd [#allocation6], 4294957056 }
  0x43   :  { %2529 = dma.done.wait [#allocation9], 9216  }
  0x44   :  { %2530 = vsyncadd [#allocation9], 4294958080  ;;  %v2243_v0 = vld [vmem:[#allocation5 + $0x78] sm:$0xff]   ;;  %v2247_v4 = vld [vmem:[#allocation5 + $0x70] sm:$0xff]   ;;  %v2548_v24 = vmov 1983009808   ;;  %v131_v26 = vlaneseq }
  0x45   :  { %v2244_v1 = vld [vmem:[#allocation5 + $0xf8] sm:$0xff]   ;;  %2107 = vmatprep.subr.bf16.mxu0 %v2243_v0  ;;  %v2248_v5 = vld [vmem:[#allocation5 + $0xf0] sm:$0xff]   ;;  %v2251_v8 = vld [vmem:[#allocation5 + $0x68] sm:$0xff]   ;;  %v129_v25 = vunpack.c.l.s4 %v2548_v24  ;;  %vm2551_vm0 = vmmov 0  }
  0x46   :  { %v2245_v2 = vld [vmem:[#allocation5 + $0x38] sm:$0xff]   ;;  %2129 = vmatprep.subr.bf16.mxu1 %v2244_v1  ;;  %v2249_v6 = vld [vmem:[#allocation5 + $0x30] sm:$0xff]   ;;  %v2252_v9 = vld [vmem:[#allocation5 + $0xe8] sm:$0xff]   ;;  %v2638_v32 = vshrl.u32 %v131_v26, 7 }
  0x47   :  { %v2246_v3 = vld [vmem:[#allocation5 + $0xb8] sm:$0xff]   ;;  %2108 = vmatpush3.bf16.msra.mxu0 %v2245_v2  ;;  %v2250_v7 = vld [vmem:[#allocation5 + $0xb0] sm:$0xff]   ;;  %v2253_v10 = vld [vmem:[#allocation5 + $0x28] sm:$0xff]   ;;  %v130_v31 = vunpack.c.0.s8 %v129_v25 }
  0x48   :  { %2130 = vmatpush3.bf16.msra.mxu1 %v2246_v3  ;;  %2109 = vmatprep.subr.bf16.mxu0 %v2247_v4  ;;  %v2254_v11 = vld [vmem:[#allocation5 + $0xa8] sm:$0xff]   ;;  %v2255_v12 = vld [vmem:[#allocation5 + $0x60] sm:$0xff]   ;;  %v2259_v16 = vld [vmem:[#allocation5 + $0x58] sm:$0xff]  }
  0x49   :  { %2131 = vmatprep.subr.bf16.mxu1 %v2248_v5  ;;  %v2256_v13 = vld [vmem:[#allocation5 + $0xe0] sm:$0xff]   ;;  %v2260_v17 = vld [vmem:[#allocation5 + $0xd8] sm:$0xff]   ;;  %v2263_v20 = vld [vmem:[#allocation5 + $0x50] sm:$0xff]   ;;  %v2641_v37 = vsub.s32 %v130_v31, %v2638_v32 }
  0x4a   :  { %v2257_v14 = vld [vmem:[#allocation5 + $0x20] sm:$0xff]   ;;  %v2261_v18 = vld [vmem:[#allocation5 + $0x18] sm:$0xff]   ;;  %v2264_v21 = vld [vmem:[#allocation5 + $0xd0] sm:$0xff]  }
  0x4b   :  { %2110 = vmatpush3.bf16.msra.mxu0 %v2249_v6  ;;  %v2258_v15 = vld [vmem:[#allocation5 + $0xa0] sm:$0xff]   ;;  %v2262_v19 = vld [vmem:[#allocation5 + $0x98] sm:$0xff]   ;;  %v2265_v22 = vld [vmem:[#allocation5 + $0x10] sm:$0xff]  }
  0x4c   :  { %2132 = vmatpush3.bf16.msra.mxu1 %v2250_v7  ;;  %2111 = vmatprep.subr.bf16.mxu0 %v2251_v8  ;;  %v2266_v23 = vld [vmem:[#allocation5 + $0x90] sm:$0xff]   ;;  %v2267_v27 = vld [vmem:[#allocation5 + $0x48] sm:$0xff]   ;;  %v2271_v33 = vld [vmem:[#allocation5 + $0x40] sm:$0xff]  }
  0x4d   :  { %2133 = vmatprep.subr.bf16.mxu1 %v2252_v9  ;;  %v2268_v28 = vld [vmem:[#allocation5 + $0xc8] sm:$0xff]   ;;  %v2272_v34 = vld [vmem:[#allocation5 + $0xc0] sm:$0xff]   ;;  %v2281_v44 = vld [vmem:[#allocation5 + $0x178] sm:$0xff]  }
  0x4e   :  { %v2269_v29 = vld [vmem:[#allocation5 + $0x8] sm:$0xff]   ;;  %v2273_v35 = vld [vmem:[#allocation5] sm:$0xff]   ;;  %v2282_v47 = vld [vmem:[#allocation5 + $0x1f8] sm:$0xff]  }
  0x4f   :  { %2112 = vmatpush3.bf16.msra.mxu0 %v2253_v10  ;;  %v2270_v30 = vld [vmem:[#allocation5 + $0x88] sm:$0xff]   ;;  %v2274_v36 = vld [vmem:[#allocation5 + $0x80] sm:$0xff]   ;;  %v2283_v50 = vld [vmem:[#allocation5 + $0x138] sm:$0xff]  }
  0x50   :  { %2134 = vmatpush3.bf16.msra.mxu1 %v2254_v11  ;;  %2113 = vmatprep.subr.bf16.mxu0 %v2255_v12  ;;  %v2275_v38 = vld [vmem:[#allocation2] ss:$16 sps:$4 sm:$0xff]   ;;  %v2279_v40 = vld [vmem:[#allocation2 + $0x4] ss:$16 sps:$4 sm:$0xff]   ;;  %v2284_v53 = vld [vmem:[#allocation5 + $0x1b8] sm:$0xff]  }
  0x51   :  { %2135 = vmatprep.subr.bf16.mxu1 %v2256_v13  ;;  %v2277_v39 = vld [vmem:[#allocation2 + $0x20] ss:$16 sps:$4 sm:$0xff]   ;;  %v2280_v41 = vld [vmem:[#allocation2 + $0x24] ss:$16 sps:$4 sm:$0xff]   ;;  %v134_v42 = vrot.slane %v2275_v38, %v2641_v37  ;;  %v141_v45 = vrot.slane %v2279_v40, %v2641_v37  ;;  %v2289_v62 = vld [vmem:[#allocation5 + $0x168] sm:$0xff]  }
  0x52   :  { %v148_v43 = vrot.slane %v2277_v39, %v2641_v37  ;;  %v155_v46 = vrot.slane %v2280_v41, %v2641_v37  ;;  %v2285_v56 = vld [vmem:[#allocation5 + $0x170] sm:$0xff]   ;;  %v2290_v63 = vld [vmem:[#allocation5 + $0x1e8] sm:$0xff]   ;;  %v2293_v2 = vld [vmem:[#allocation5 + $0x160] sm:$0xff]  }
  0x53   :  { %2114 = vmatpush3.bf16.msra.mxu0 %v2257_v14  ;;  %v2286_v59 = vld [vmem:[#allocation5 + $0x1f0] sm:$0xff]   ;;  %v2291_v0 = vld [vmem:[#allocation5 + $0x128] sm:$0xff]   ;;  %v2294_v3 = vld [vmem:[#allocation5 + $0x1e0] sm:$0xff]  }
  0x54   :  { %2136 = vmatpush3.bf16.msra.mxu1 %v2258_v15  ;;  %2115 = vmatprep.subr.bf16.mxu0 %v2259_v16  ;;  %v157_v48 = vcombine.high %v134_v42, %v148_v43  ;;  %v156_v49 = vcombine.low %v134_v42, %v148_v43  ;;  %v159_v51 = vcombine.high %v141_v45, %v155_v46  ;;  %v2287_v60 = vld [vmem:[#allocation5 + $0x130] sm:$0xff]   ;;  %v2292_v1 = vld [vmem:[#allocation5 + $0x1a8] sm:$0xff]   ;;  %v2295_v4 = vld [vmem:[#allocation5 + $0x120] sm:$0xff]  }
  0x55   :  { %2137 = vmatprep.subr.bf16.mxu1 %v2260_v17  ;;  %v158_v52 = vcombine.low %v141_v45, %v155_v46  ;;  %v2288_v61 = vld [vmem:[#allocation5 + $0x1b0] sm:$0xff]   ;;  %v2296_v5 = vld [vmem:[#allocation5 + $0x1a0] sm:$0xff]   ;;  %v2297_v6 = vld [vmem:[#allocation5 + $0x158] sm:$0xff]  }
  0x56   :  { %v205_v54 = vpack.c.bf16 %v157_v48, %v157_v48  ;;  %v204_v55 = vpack.c.bf16 %v156_v49, %v156_v49  ;;  %v207_v57 = vpack.c.bf16 %v159_v51, %v159_v51  ;;  %v2298_v7 = vld [vmem:[#allocation5 + $0x1d8] sm:$0xff]   ;;  %v2301_v10 = vld [vmem:[#allocation5 + $0x150] sm:$0xff]   ;;  %v2305_v14 = vld [vmem:[#allocation5 + $0x148] sm:$0xff]  }
  0x57   :  { %2116 = vmatpush3.bf16.msra.mxu0 %v2261_v18  ;;  %v206_v58 = vpack.c.bf16 %v158_v52, %v158_v52  ;;  %v2299_v8 = vld [vmem:[#allocation5 + $0x118] sm:$0xff]   ;;  %v2302_v11 = vld [vmem:[#allocation5 + $0x1d0] sm:$0xff]   ;;  %v2306_v15 = vld [vmem:[#allocation5 + $0x1c8] sm:$0xff]  }
  0x58   :  { %2138 = vmatpush3.bf16.msra.mxu1 %v2262_v19  ;;  %2117 = vmatprep.subr.bf16.mxu0 %v2263_v20  ;;  %v2300_v9 = vld [vmem:[#allocation5 + $0x198] sm:$0xff]   ;;  %v2303_v12 = vld [vmem:[#allocation5 + $0x110] sm:$0xff]   ;;  %v2307_v16 = vld [vmem:[#allocation5 + $0x108] sm:$0xff]  }
  0x59   :  { %2139 = vmatprep.subr.bf16.mxu1 %v2264_v21  ;;  %763 = vmatprep.mubr.bf16.mxu0 %v205_v54  ;;  %v2304_v13 = vld [vmem:[#allocation5 + $0x190] sm:$0xff]   ;;  %v2308_v17 = vld [vmem:[#allocation5 + $0x188] sm:$0xff]   ;;  %v2309_v18 = vld [vmem:[#allocation5 + $0x140] sm:$0xff]  }
  0x5a   :  { %803 = vmatprep.mubr.bf16.mxu1 %v207_v57  ;;  %v2310_v19 = vld [vmem:[#allocation5 + $0x1c0] sm:$0xff]   ;;  %v2317_v24 = vld [vmem:[#allocation2 + $0xc] ss:$16 sps:$4 sm:$0xff]   ;;  %v2319_v40 = vld [vmem:[#allocation7 + $0x70] ss:$8 sps:$4 sm:$0xff]  }
  0x5b   :  { %2118 = vmatpush3.bf16.msra.mxu0 %v2265_v22  ;;  %v2311_v20 = vld [vmem:[#allocation5 + $0x100] sm:$0xff]   ;;  %v2313_v22 = vld [vmem:[#allocation2 + $0x8] ss:$16 sps:$4 sm:$0xff]   ;;  %v2318_v25 = vld [vmem:[#allocation2 + $0x2c] ss:$16 sps:$4 sm:$0xff]  }
  0x5c   :  { %2140 = vmatpush3.bf16.msra.mxu1 %v2266_v23  ;;  %2119 = vmatprep.subr.bf16.mxu0 %v2267_v27  ;;  %v2312_v21 = vld [vmem:[#allocation5 + $0x180] sm:$0xff]   ;;  %v2315_v23 = vld [vmem:[#allocation2 + $0x28] ss:$16 sps:$4 sm:$0xff]   ;;  %v170_v26 = vrot.slane %v2313_v22, %v2641_v37  ;;  %v2321_v41 = vld [vmem:[#allocation7 + $0x74] ss:$8 sps:$4 sm:$0xff]  }
  0x5d   :  { %2141 = vmatprep.subr.bf16.mxu1 %v2268_v28  ;;  %v184_v27 = vrot.slane %v2315_v23, %v2641_v37  ;;  %v177_v28 = vrot.slane %v2317_v24, %v2641_v37  ;;  %v2324_v42 = vld [vmem:[#allocation7 + $0x64] ss:$8 sps:$4 sm:$0xff]   ;;  %v2322_v43 = vld [vmem:[#allocation7 + $0x60] ss:$8 sps:$4 sm:$0xff]   ;;  %v2325_v45 = vld [vmem:[#allocation7 + $0x50] ss:$8 sps:$4 sm:$0xff]  }
  0x5e   :  { %v2330_v46 = vld [vmem:[#allocation7 + $0x44] ss:$8 sps:$4 sm:$0xff]   ;;  %v2333_v48 = vld [vmem:[#allocation7 + $0x34] ss:$8 sps:$4 sm:$0xff]   ;;  %v2331_v49 = vld [vmem:[#allocation7 + $0x30] ss:$8 sps:$4 sm:$0xff]  }
  0x5f   :  { %2120 = vmatpush3.bf16.msra.mxu0 %v2269_v29  ;;  %v191_v29 = vrot.slane %v2318_v25, %v2641_v37  ;;  %v192_v31 = vcombine.low %v170_v26, %v184_v27  ;;  %v2334_v51 = vld [vmem:[#allocation7 + $0x20] ss:$8 sps:$4 sm:$0xff]   ;;  %v2339_v52 = vld [vmem:[#allocation7 + $0x14] ss:$8 sps:$4 sm:$0xff]   ;;  %v2342_v54 = vld [vmem:[#allocation7 + $0x4] ss:$8 sps:$4 sm:$0xff]  }
  0x60   :  { %2142 = vmatpush3.bf16.msra.mxu1 %v2270_v30  ;;  %2121 = vmatprep.subr.bf16.mxu0 %v2271_v33  ;;  %v193_v30 = vcombine.high %v170_v26, %v184_v27  ;;  %v2343_v57 = vld [vmem:[#allocation8 + $0x38] sm:$0xff]   ;;  %v2344_v22 = vld [vmem:[#allocation8 + $0x30] sm:$0xff]   ;;  %v2345_v23 = vld [vmem:[#allocation8 + $0x28] sm:$0xff]  }
  0x61   :  { %2143 = vmatprep.subr.bf16.mxu1 %v2272_v34  ;;  %v195_v33 = vcombine.high %v177_v28, %v191_v29  ;;  %v194_v34 = vcombine.low %v177_v28, %v191_v29  ;;  %v2346_v24 = vld [vmem:[#allocation8 + $0x20] sm:$0xff]   ;;  %v2347_v25 = vld [vmem:[#allocation8 + $0x18] sm:$0xff]   ;;  %v2348_v26 = vld [vmem:[#allocation8 + $0x10] sm:$0xff]  }
  0x62   :  { %v2349_v27 = vld [vmem:[#allocation8 + $0x8] sm:$0xff]   ;;  %v2350_v28 = vld [vmem:[#allocation8] sm:$0xff]  }
  0x63   :  { %2122 = vmatpush3.bf16.msra.mxu0 %v2273_v35  ;;  %v209_v35 = vpack.c.bf16 %v193_v30, %v193_v30  ;;  %v211_v38 = vpack.c.bf16 %v195_v33, %v195_v33  ;;  %v210_v39 = vpack.c.bf16 %v194_v34, %v194_v34  ;;  %v1218_v29 = vld [vmem:[#allocation10 + $0x1c0] sm:$0xff] }
  0x64   :  { %2144 = vmatpush3.bf16.msra.mxu1 %v2274_v36  ;;  %2151 = vmatprep.subr.bf16.mxu0 %v2281_v44  ;;  %v208_v36 = vpack.c.bf16 %v192_v31, %v192_v31  ;;  %v2327_v44 = vld [vmem:[#allocation7 + $0x54] ss:$8 sps:$4 sm:$0xff]   ;;  %v1222_v30 = vld [vmem:[#allocation10 + $0x1e0] sm:$0xff]  ;;  %v2656_v31 = vld [vmem:[#allocation10 + $0x1c8] sm:$0xff] }
  0x65   :  { %2173 = vmatprep.subr.bf16.mxu1 %v2282_v47  ;;  %v2328_v47 = vld [vmem:[#allocation7 + $0x40] ss:$8 sps:$4 sm:$0xff]   ;;  %v2097_v33 = vcombine.low %v1218_v29, %v1222_v30  ;;  %v2098_v34 = vcombine.high %v1218_v29, %v1222_v30 }
  0x66   :  { %764 = vmatmul.mubr.bf16.vlgmr.msra.gmra.mxu0 %v204_v55  ;;  %v2340_v55 = vld [vmem:[#allocation7] ss:$8 sps:$4 sm:$0xff]  }
  0x67   :  { %804 = vmatmul.mubr.bf16.vlgmr.msra.gmra.mxu1 %v206_v58  ;;  %2152 = vmatpush3.bf16.msra.mxu0 %v2283_v50  ;;  %v2336_v50 = vld [vmem:[#allocation7 + $0x24] ss:$8 sps:$4 sm:$0xff]   ;;  %v2550_v58 = vmov 0.0  }
  0x68   :  { %2174 = vmatpush3.bf16.msra.mxu1 %v2284_v53  ;;  %2153 = vmatprep.subr.bf16.mxu0 %v2285_v56  ;;  %v2337_v53 = vld [vmem:[#allocation7 + $0x10] ss:$8 sps:$4 sm:$0xff]   ;;  %v2549_v56 = vmov 0  }
  0x69   :  { %2175 = vmatprep.subr.bf16.mxu1 %v2286_v59  ;;  %843 = vmatprep.mubr.bf16.mxu0 %v209_v35  ;;  %v2658_v35 = vld [vmem:[#allocation10 + $0x1e8] sm:$0xff] }
  0x6a   :  { %883 = vmatprep.mubr.bf16.mxu1 %v211_v38  ;;  %v1214_v38 = vld [vmem:[#allocation10 + $0x1a0] sm:$0xff] }
  0x6b   :  { %2154 = vmatpush3.bf16.msra.mxu0 %v2287_v60 }
  0x6c   :  { %2176 = vmatpush3.bf16.msra.mxu1 %v2288_v61  ;;  %2155 = vmatprep.subr.bf16.mxu0 %v2289_v62 }
  0x6d   :  { %2177 = vmatprep.subr.bf16.mxu1 %v2290_v63 }
  0x6f   :  { %2156 = vmatpush3.bf16.msra.mxu0 %v2291_v0 }
  0x70   :  { %2178 = vmatpush3.bf16.msra.mxu1 %v2292_v1  ;;  %2157 = vmatprep.subr.bf16.mxu0 %v2293_v2 }
  0x71   :  { %2179 = vmatprep.subr.bf16.mxu1 %v2294_v3 }
  0x73   :  { %2158 = vmatpush3.bf16.msra.mxu0 %v2295_v4  ;;  %v1951_v4 = vld [vmem:[%s2728_s2] ss:$0 sm:$0xff] }
  0x74   :  { %2180 = vmatpush3.bf16.msra.mxu1 %v2296_v5  ;;  %2159 = vmatprep.subr.bf16.mxu0 %v2297_v6 }
  0x75   :  { %2181 = vmatprep.subr.bf16.mxu1 %v2298_v7 }
  0x77   :  { %2160 = vmatpush3.bf16.msra.mxu0 %v2299_v8 }
  0x78   :  { %2182 = vmatpush3.bf16.msra.mxu1 %v2300_v9  ;;  %2161 = vmatprep.subr.bf16.mxu0 %v2301_v10 }
  0x79   :  { %2183 = vmatprep.subr.bf16.mxu1 %v2302_v11 }
  0x7b   :  { %2162 = vmatpush3.bf16.msra.mxu0 %v2303_v12 }
  0x7c   :  { %2184 = vmatpush3.bf16.msra.mxu1 %v2304_v13  ;;  %2163 = vmatprep.subr.bf16.mxu0 %v2305_v14 }
  0x7d   :  { %2185 = vmatprep.subr.bf16.mxu1 %v2306_v15 }
  0x7f   :  { %2164 = vmatpush3.bf16.msra.mxu0 %v2307_v16 }
  0x80   :  { %2186 = vmatpush3.bf16.msra.mxu1 %v2308_v17  ;;  %2165 = vmatprep.subr.bf16.mxu0 %v2309_v18 }
  0x81   :  { %2187 = vmatprep.subr.bf16.mxu1 %v2310_v19 }
  0x83   :  { %2166 = vmatpush3.bf16.msra.mxu0 %v2311_v20 }
  0x84   :  { %2188 = vmatpush3.bf16.msra.mxu1 %v2312_v21  ;;  %1001 = vmatprep.subr.bf16.mxu0 %v2321_v41 }
  0x85   :  { %2204 = vmatprep.subr.bf16.mxu1 %v2550_v58 }
  0x86   :  { %844 = vmatmul.mubr.bf16.vlgmr.msra.gmra.mxu0 %v208_v36  ;;  %v1210_v36 = vld [vmem:[#allocation10 + $0x180] sm:$0xff] }
  0x87   :  { %884 = vmatmul.mubr.bf16.vlgmr.msra.gmra.mxu1 %v210_v39  ;;  %1002 = vmatpush1.bf16.msra.mxu0 %v2319_v40  ;;  %v2099_v39 = vcombine.low %v2656_v31, %v2658_v35  ;;  %v2100_v40 = vcombine.high %v2656_v31, %v2658_v35  ;;  %v2090_v41 = vcombine.high %v1210_v36, %v1214_v38  ;;  %v1183_v31 = vld [vmem:[#allocation10 + $0xa8] sm:$0xff] }
  0x88   :  { %1003 = vmatprep.subr.bf16.mxu0 %v2324_v42  ;;  %1033 = vmatprep.mubr.bf16.mxu0 %v2549_v56  ;;  %v2089_v42 = vcombine.low %v1210_v36, %v1214_v38 }
  0x89   :  { %2205 = vmatpush3.bf16.msra.mxu1 %v2343_v57  ;;  %2220 = vmatprep.mubr.msk.bf16.mxu1 %vm2551_vm0, %v2550_v58  ;;  %v1182_v57 = vld [vmem:[#allocation10 + $0xa0] sm:$0xff] }
  0x8a   :  { %2206 = vmatprep.subr.bf16.mxu1 %v2550_v58 }
  0x8b   :  { %1004 = vmatpush1.bf16.msra.mxu0 %v2322_v43  ;;  %v1202_v43 = vld [vmem:[#allocation10 + $0x140] sm:$0xff] }
  0x8c   :  { %1005 = vmatprep.subr.bf16.mxu0 %v2327_v44  ;;  %v1206_v44 = vld [vmem:[#allocation10 + $0x160] sm:$0xff] }
  0x8d   :  { %2207 = vmatpush3.bf16.msra.mxu1 %v2344_v22  ;;  %v1211_v22 = vld [vmem:[#allocation10 + $0x188] sm:$0xff] }
  0x8e   :  { %2208 = vmatprep.subr.bf16.mxu1 %v2550_v58 }
  0x8f   :  { %1006 = vmatpush1.bf16.msra.mxu0 %v2325_v45  ;;  %v2082_v45 = vcombine.high %v1202_v43, %v1206_v44 }
  0x90   :  { %1007 = vmatprep.subr.bf16.mxu0 %v2330_v46  ;;  %v2081_v46 = vcombine.low %v1202_v43, %v1206_v44  ;;  %v1179_v44 = vld [vmem:[#allocation10 + $0x88] sm:$0xff] }
  0x91   :  { %2209 = vmatpush3.bf16.msra.mxu1 %v2345_v23  ;;  %v1215_v23 = vld [vmem:[#allocation10 + $0x1a8] sm:$0xff] }
  0x92   :  { %2210 = vmatprep.subr.bf16.mxu1 %v2550_v58  ;;  %v2091_v29 = vcombine.low %v1211_v22, %v1215_v23 }
  0x93   :  { %1008 = vmatpush1.bf16.msra.mxu0 %v2328_v47  ;;  %v1194_v47 = vld [vmem:[#allocation10 + $0x100] sm:$0xff] }
  0x94   :  { %1009 = vmatprep.subr.bf16.mxu0 %v2333_v48  ;;  %v1198_v48 = vld [vmem:[#allocation10 + $0x120] sm:$0xff] }
  0x95   :  { %2211 = vmatpush3.bf16.msra.mxu1 %v2346_v24 }
  0x96   :  { %2212 = vmatprep.subr.bf16.mxu1 %v2550_v58 }
  0x97   :  { %1010 = vmatpush1.bf16.msra.mxu0 %v2331_v49  ;;  %v2074_v49 = vcombine.high %v1194_v47, %v1198_v48 }
  0x98   :  { %1011 = vmatprep.subr.bf16.mxu0 %v2336_v50  ;;  %v2073_v50 = vcombine.low %v1194_v47, %v1198_v48  ;;  %v2059_v47 = vcombine.low %v1179_v44, %v1183_v31 }
  0x99   :  { %2213 = vmatpush3.bf16.msra.mxu1 %v2347_v25 }
  0x9a   :  { %2214 = vmatprep.subr.bf16.mxu1 %v2550_v58 }
  0x9b   :  { %1012 = vmatpush1.bf16.msra.mxu0 %v2334_v51  ;;  %v1186_v51 = vld [vmem:[#allocation10 + $0xc0] sm:$0xff] }
  0x9c   :  { %1013 = vmatprep.subr.bf16.mxu0 %v2339_v52  ;;  %v1190_v52 = vld [vmem:[#allocation10 + $0xe0] sm:$0xff] }
  0x9d   :  { %2215 = vmatpush3.bf16.msra.mxu1 %v2348_v26  ;;  %v2092_v26 = vcombine.high %v1211_v22, %v1215_v23  ;;  %v1209_v22 = vld [vmem:[#allocation10 + $0x178] sm:$0xff] }
  0x9e   :  { %2216 = vmatprep.subr.bf16.mxu1 %v2550_v58 }
  0x9f   :  { %1014 = vmatpush1.bf16.msra.mxu0 %v2337_v53  ;;  %v2066_v53 = vcombine.high %v1186_v51, %v1190_v52 }
  0xa0   :  { %1015 = vmatprep.subr.bf16.mxu0 %v2342_v54  ;;  %v2065_v54 = vcombine.low %v1186_v51, %v1190_v52  ;;  %v1166_v51 = vld [vmem:[#allocation10 + $0x20] sm:$0xff]  ;;  %v1163_v52 = vld [vmem:[#allocation10 + $0x8] sm:$0xff] }
  0xa1   :  { %2217 = vmatpush3.bf16.msra.mxu1 %v2349_v27  ;;  %v1203_v27 = vld [vmem:[#allocation10 + $0x148] sm:$0xff] }
  0xa2   :  { %2218 = vmatprep.subr.bf16.mxu1 %v2550_v58 }
  0xa3   :  { %1016 = vmatpush1.bf16.msra.mxu0 %v2340_v55  ;;  %v1178_v55 = vld [vmem:[#allocation10 + $0x80] sm:$0xff] }
  0xa4   :  { %1588 = vmatprep.subr.bf16.mxu0 %v2098_v34  ;;  %v2058_v58 = vcombine.high %v1178_v55, %v1182_v57  ;;  %v1199_v34 = vld [vmem:[#allocation10 + $0x128] sm:$0xff] }
  0xa5   :  { %2219 = vmatpush3.bf16.msra.mxu1 %v2350_v28  ;;  %v1207_v28 = vld [vmem:[#allocation10 + $0x168] sm:$0xff] }
  0xa6   :  { %1629 = vmatprep.subr.bf16.mxu1 %v2100_v40  ;;  %v2084_v30 = vcombine.high %v1203_v27, %v1207_v28  ;;  %v2083_v36 = vcombine.low %v1203_v27, %v1207_v28  ;;  %v1187_v40 = vld [vmem:[#allocation10 + $0xc8] sm:$0xff]  ;;  %v1196_v27 = vld [vmem:[#allocation10 + $0x110] sm:$0xff] }
  0xa7   :  { %v1200_v28 = vld [vmem:[#allocation10 + $0x130] sm:$0xff] }
 0x126   :  { %v2123_v59 = vpop.f32.mrf.mxu0 }
 0x127   :  { %v2145_v60 = vpop.f32.mrf.mxu1 }
 0x128   :  { %v2124_v61 = vpop.f32.mrf.mxu0 }
 0x129   :  { %v2146_v62 = vpop.f32.mrf.mxu1  ;;  %v2125_v3 = vadd.f32 %v2124_v61, %v2123_v59  ;;  %v2057_v59 = vcombine.low %v1178_v55, %v1182_v57  ;;  %v1174_v61 = vld [vmem:[#allocation10 + $0x60] sm:$0xff] }
 0x12a   :  { %v2126_v63 = vpop.f32.mrf.mxu0  ;;  %v2147_v6 = vadd.f32 %v2146_v62, %v2145_v60  ;;  %v1170_v60 = vld [vmem:[#allocation10 + $0x40] sm:$0xff] }
 0x12b   :  { %v2148_v0 = vpop.f32.mrf.mxu1  ;;  %v766_v5 = vadd.f32 %v2125_v3, %v1951_v4  ;;  %v2050_v62 = vcombine.high %v1170_v60, %v1174_v61  ;;  %v2049_v63 = vcombine.low %v1170_v60, %v1174_v61  ;;  %v1224_v60 = vld [vmem:[#allocation10 + $0x1f0] sm:$0xff]  ;;  %v1221_v61 = vld [vmem:[#allocation10 + $0x1d8] sm:$0xff] }
 0x12c   :  { %v2127_v1 = vpop.f32.mrf.mxu0  ;;  %v913_v0 = vsub.s32 0, %v2638_v32 }
 0x12d   :  { %v2149_v2 = vpop.f32.mrf.mxu1  ;;  %v806_v10 = vadd.f32 %v2147_v6, %v766_v5  ;;  %v909_v1 = vld [vmem:[%s2730_s4] sm:$0x3] }
 0x12e   :  { %v917_v2 = vsub.s32 1, %v2638_v32  ;;  %v914_v3 = vrot.slane %v909_v1, %v913_v0 }
 0x130   :  { %v918_v4 = vrot.slane %v909_v1, %v917_v2 }
 0x146   :  { %v2167_v7 = vpop.f32.mrf.mxu0 }
 0x147   :  { %v2189_v8 = vpop.f32.mrf.mxu1 }
 0x148   :  { %v2168_v9 = vpop.f32.mrf.mxu0 }
 0x149   :  { %v2169_v11 = vadd.f32 %v2168_v9, %v2167_v7  ;;  %v2190_v12 = vpop.f32.mrf.mxu1 }
 0x14a   :  { %v2170_v13 = vpop.f32.mrf.mxu0  ;;  %v2191_v15 = vadd.f32 %v2190_v12, %v2189_v8 }
 0x14b   :  { %v846_v14 = vadd.f32 %v2169_v11, %v806_v10  ;;  %v2192_v16 = vpop.f32.mrf.mxu1 }
 0x14c   :  { %v2171_v17 = vpop.f32.mrf.mxu0 }
 0x14d   :  { %v886_v18 = vadd.f32 %v2191_v15, %v846_v14  ;;  %v2193_v19 = vpop.f32.mrf.mxu1 }
 0x14e   :  { %v1042_v19 = vld [vmem:[%s2731_s5] sm:$0xff] }
 0x14f   :  { %v891_v20 = vmax.f32 %v886_v18, 0.0 }
 0x151   :  { %v892_v21 = vpack.c.bf16 %v891_v20, %v891_v20 }
 0x153   :  { %1034 = vmatmul.mubr.bf16.vlgmr.msra.gmra.mxu0 %v892_v21 }
 0x154   :  { %1620 = vmatprep.mubr.bf16.mxu0 %v2549_v56  ;;  %1589 = vmatpush1.bf16.msra.mxu0 %v2097_v33  ;;  %v1195_v33 = vld [vmem:[#allocation10 + $0x108] sm:$0xff] }
 0x155   :  { %1590 = vmatprep.subr.bf16.mxu0 %v2090_v41  ;;  %v2076_v38 = vcombine.high %v1195_v33, %v1199_v34  ;;  %v1191_v41 = vld [vmem:[#allocation10 + $0xe8] sm:$0xff] }
 0x156   :  { %v2068_v43 = vcombine.high %v1187_v40, %v1191_v41  ;;  %v2067_v35 = vcombine.low %v1187_v40, %v1191_v41  ;;  %v1188_v40 = vld [vmem:[#allocation10 + $0xd0] sm:$0xff] }
 0x157   :  { %v1192_v41 = vld [vmem:[#allocation10 + $0xf0] sm:$0xff] }
 0x158   :  { %1591 = vmatpush1.bf16.msra.mxu0 %v2089_v42  ;;  %v2075_v42 = vcombine.low %v1195_v33, %v1199_v34 }
 0x159   :  { %1592 = vmatprep.subr.bf16.mxu0 %v2082_v45  ;;  %v1171_v45 = vld [vmem:[#allocation10 + $0x48] sm:$0xff] }
 0x15c   :  { %1593 = vmatpush1.bf16.msra.mxu0 %v2081_v46  ;;  %v1175_v46 = vld [vmem:[#allocation10 + $0x68] sm:$0xff] }
 0x15d   :  { %1594 = vmatprep.subr.bf16.mxu0 %v2074_v49  ;;  %v2052_v48 = vcombine.high %v1171_v45, %v1175_v46  ;;  %v2051_v49 = vcombine.low %v1171_v45, %v1175_v46  ;;  %v1184_v45 = vld [vmem:[#allocation10 + $0xb0] sm:$0xff]  ;;  %v1181_v46 = vld [vmem:[#allocation10 + $0x98] sm:$0xff] }
 0x160   :  { %1595 = vmatpush1.bf16.msra.mxu0 %v2073_v50  ;;  %v1162_v50 = vld [vmem:[#allocation10] sm:$0xff] }
 0x161   :  { %1596 = vmatprep.subr.bf16.mxu0 %v2066_v53  ;;  %v2042_v53 = vcombine.high %v1162_v50, %v1166_v51  ;;  %v2041_v55 = vcombine.low %v1162_v50, %v1166_v51 }
 0x164   :  { %1597 = vmatpush1.bf16.msra.mxu0 %v2065_v54  ;;  %v1167_v54 = vld [vmem:[#allocation10 + $0x28] sm:$0xff] }
 0x165   :  { %1598 = vmatprep.subr.bf16.mxu0 %v2058_v58  ;;  %v2043_v57 = vcombine.low %v1163_v52, %v1167_v54  ;;  %v2044_v58 = vcombine.high %v1163_v52, %v1167_v54  ;;  %v1172_v52 = vld [vmem:[#allocation10 + $0x50] sm:$0xff]  ;;  %v1173_v54 = vld [vmem:[#allocation10 + $0x58] sm:$0xff] }
 0x168   :  { %1599 = vmatpush1.bf16.msra.mxu0 %v2057_v59  ;;  %v1220_v59 = vld [vmem:[#allocation10 + $0x1d0] sm:$0xff] }
 0x169   :  { %1600 = vmatprep.subr.bf16.mxu0 %v2050_v62  ;;  %v2102_v62 = vcombine.high %v1220_v59, %v1224_v60  ;;  %v2101_v1 = vcombine.low %v1220_v59, %v1224_v60 }
 0x16c   :  { %1601 = vmatpush1.bf16.msra.mxu0 %v2049_v63  ;;  %v1225_v63 = vld [vmem:[#allocation10 + $0x1f8] sm:$0xff] }
 0x16d   :  { %1602 = vmatprep.subr.bf16.mxu0 %v2042_v53  ;;  %v1176_v53 = vld [vmem:[#allocation10 + $0x70] sm:$0xff] }
 0x16e   :  { %v2054_v59 = vcombine.high %v1172_v52, %v1176_v53 }
 0x170   :  { %1603 = vmatpush1.bf16.msra.mxu0 %v2041_v55  ;;  %v1177_v55 = vld [vmem:[#allocation10 + $0x78] sm:$0xff] }
 0x171   :  { %1670 = vmatprep.subr.bf16.mxu0 %v2102_v62  ;;  %v2056_v60 = vcombine.high %v1173_v54, %v1177_v55  ;;  %v1168_v62 = vld [vmem:[#allocation10 + $0x30] sm:$0xff] }
 0x213   :  { %v1035_v5 = vpop.f32.mrf.mxu0 }
 0x214   :  { %v1036_v6 = vadd.f32 %v1035_v5, %v914_v3  ;;  %v2103_v3 = vcombine.low %v1221_v61, %v1225_v63  ;;  %v2032_v5 = vld [vmem:[%s2733_s7] ss:$0 sm:$0xff] }
 0x215   :  { %v1037_v7 = vpop.f32.mrf.mxu0 }
 0x216   :  { %v1043_v8 = vmul.f32 0.5, %v1036_v6  ;;  %v1038_v9 = vadd.f32 %v1037_v7, %v918_v4  ;;  %v2104_v4 = vcombine.high %v1221_v61, %v1225_v63  ;;  %v1164_v61 = vld [vmem:[#allocation10 + $0x10] sm:$0xff]  ;;  %v1165_v63 = vld [vmem:[#allocation10 + $0x18] sm:$0xff] }
 0x217   :  { %v1039_v10 = vpop.f32.mrf.mxu0 }
 0x218   :  { %v1044_v11 = vmul.f32 1.442695, %v1043_v8  ;;  %v1890_v12 = vcombine.low %v1036_v6, %v1038_v9  ;;  %v1891_v13 = vcombine.high %v1036_v6, %v1038_v9  ;;  %v1212_v8 = vld [vmem:[#allocation10 + $0x190] sm:$0xff] }
 0x219   :  { %v1040_v14 = vpop.f32.mrf.mxu0  ;;  %v1216_v10 = vld [vmem:[#allocation10 + $0x1b0] sm:$0xff] }
 0x21a   :  { %2351 = vpow2.f32 %v1044_v11  ;;  %v1898_v15 = vrot.slane %v1890_v12, %v2641_v37  ;;  %v1905_v16 = vrot.slane %v1891_v13, %v2641_v37  ;;  %2105 = vst.sshfl [vmem:[#allocation12] sm:$0x33 pattern:$0x76325410] %v1890_v12  ;;  %v1213_v11 = vld [vmem:[#allocation10 + $0x198] sm:$0xff]  ;;  %v2093_v23 = vcombine.low %v1212_v8, %v1216_v10 }
 0x21b   :  { %2106 = vst.sshfl [vmem:[#allocation12 + $0x8] sm:$0x33 pattern:$0x76325410] %v1891_v13  ;;  %v1217_v12 = vld [vmem:[#allocation10 + $0x1b8] sm:$0xff] }
 0x21c   :  { %v1906_v17 = vcombine.high %v1898_v15, %v1898_v15  ;;  %v1907_v18 = vcombine.high %v1905_v16, %v1905_v16  ;;  %v2094_v16 = vcombine.high %v1212_v8, %v1216_v10  ;;  %v1226_v10 = vld [vmem:[%s2735_s9] sm:$0xff] }
 0x21e   :  { %1913 = vst [vmem:[#allocation12 + $0x4] sm:$0xf] %v1906_v17  ;;  %1915 = vst [vmem:[#allocation12 + $0xc] sm:$0xf] %v1907_v18  ;;  %v2096_v17 = vcombine.high %v1213_v11, %v1217_v12  ;;  %v1204_v18 = vld [vmem:[#allocation10 + $0x150] sm:$0xff] }
 0x227   :  { %v2352_v20 = vpop.eup %2351 }
 0x228   :  { %v1046_v21 = vmul.f32 %v2352_v20, %v1042_v19  ;;  %v1208_v20 = vld [vmem:[#allocation10 + $0x170] sm:$0xff] }
 0x229   :  { %v2085_v33 = vcombine.low %v1204_v18, %v1208_v20 }
 0x22a   :  { %v1047_v24 = vadd.f32 %v1046_v21, %v1038_v9  ;;  %v1205_v21 = vld [vmem:[#allocation10 + $0x158] sm:$0xff] }
 0x22b   :  { %v2087_v34 = vcombine.low %v1205_v21, %v1209_v22 }
 0x22c   :  { %v1048_v25 = vpack.c.bf16 %v1047_v24, %v1047_v24  ;;  %v2095_v24 = vcombine.low %v1213_v11, %v1217_v12  ;;  %v1242_v11 = vsub.s32 3, %v2638_v32  ;;  %v1231_v12 = vrot.slane %v1226_v10, %v913_v0 }
 0x22e   :  { %2221 = vmatmul.mubr.bf16.vlgmr.msra.gmra.mxu1 %v1048_v25  ;;  %v2086_v25 = vcombine.high %v1204_v18, %v1208_v20 }
 0x22f   :  { %1630 = vmatpush1.bf16.msra.mxu1 %v2099_v39  ;;  %1661 = vmatprep.mubr.bf16.mxu1 %v2549_v56  ;;  %v2060_v39 = vcombine.high %v1179_v44, %v1183_v31  ;;  %v2077_v44 = vcombine.low %v1196_v27, %v1200_v28 }
 0x230   :  { %1631 = vmatprep.subr.bf16.mxu1 %v2092_v26  ;;  %v2088_v26 = vcombine.high %v1205_v21, %v1209_v22 }
 0x233   :  { %1632 = vmatpush1.bf16.msra.mxu1 %v2091_v29  ;;  %v1197_v29 = vld [vmem:[#allocation10 + $0x118] sm:$0xff] }
 0x234   :  { %1633 = vmatprep.subr.bf16.mxu1 %v2084_v30  ;;  %v1201_v30 = vld [vmem:[#allocation10 + $0x138] sm:$0xff] }
 0x235   :  { %v2079_v31 = vcombine.low %v1197_v29, %v1201_v30 }
 0x237   :  { %1634 = vmatpush1.bf16.msra.mxu1 %v2083_v36  ;;  %v2078_v36 = vcombine.high %v1196_v27, %v1200_v28 }
 0x238   :  { %1635 = vmatprep.subr.bf16.mxu1 %v2076_v38  ;;  %v2080_v38 = vcombine.high %v1197_v29, %v1201_v30 }
 0x23b   :  { %1636 = vmatpush1.bf16.msra.mxu1 %v2075_v42  ;;  %v1189_v42 = vld [vmem:[#allocation10 + $0xd8] sm:$0xff] }
 0x23c   :  { %1637 = vmatprep.subr.bf16.mxu1 %v2068_v43  ;;  %v1193_v43 = vld [vmem:[#allocation10 + $0xf8] sm:$0xff] }
 0x23f   :  { %1638 = vmatpush1.bf16.msra.mxu1 %v2067_v35  ;;  %v2070_v35 = vcombine.high %v1188_v40, %v1192_v41 }
 0x240   :  { %1639 = vmatprep.subr.bf16.mxu1 %v2060_v39  ;;  %v1180_v39 = vld [vmem:[#allocation10 + $0x90] sm:$0xff] }
 0x241   :  { %v2062_v50 = vcombine.high %v1180_v39, %v1184_v45 }
 0x243   :  { %1640 = vmatpush1.bf16.msra.mxu1 %v2059_v47  ;;  %v1185_v47 = vld [vmem:[#allocation10 + $0xb8] sm:$0xff] }
 0x244   :  { %1641 = vmatprep.subr.bf16.mxu1 %v2052_v48  ;;  %v2069_v48 = vcombine.low %v1188_v40, %v1192_v41  ;;  %v2064_v51 = vcombine.high %v1181_v46, %v1185_v47 }
 0x247   :  { %1642 = vmatpush1.bf16.msra.mxu1 %v2051_v49  ;;  %v2071_v49 = vcombine.low %v1189_v42, %v1193_v43 }
 0x248   :  { %1643 = vmatprep.subr.bf16.mxu1 %v2044_v58  ;;  %v2063_v58 = vcombine.low %v1181_v46, %v1185_v47  ;;  %v1258_v46 = vsub.s32 7, %v2638_v32 }
 0x24b   :  { %1644 = vmatpush1.bf16.msra.mxu1 %v2043_v57  ;;  %v2061_v57 = vcombine.low %v1180_v39, %v1184_v45  ;;  %v1254_v39 = vsub.s32 6, %v2638_v32  ;;  %v1250_v45 = vsub.s32 5, %v2638_v32 }
 0x24c   :  { %1711 = vmatprep.subr.bf16.mxu1 %v2104_v4  ;;  %v2055_v4 = vcombine.low %v1173_v54, %v1177_v55 }
 0x2ee   :  { %v1154_v6 = vpop.f32.mrf.mxu1 }
 0x2ef   :  { %v1155_v7 = vadd.f32 %v2032_v5, %v1154_v6  ;;  %v2046_v5 = vcombine.high %v1164_v61, %v1168_v62 }
 0x2f0   :  { %v2222_v9 = vpop.f32.mrf.mxu1 }
 0x2f1   :  { %v1160_v13 = vmax.f32 %v1155_v7, 0.0  ;;  %v2045_v7 = vcombine.low %v1164_v61, %v1168_v62  ;;  %v1238_v9 = vsub.s32 2, %v2638_v32 }
 0x2f2   :  { %v1157_v14 = vpop.f32.mrf.mxu1 }
 0x2f3   :  { %v2685_v15 = vpack.c.bf16 %v1160_v13, %v1160_v13  ;;  %v1239_v13 = vrot.slane %v1226_v10, %v1238_v9  ;;  %v1235_v14 = vrot.slane %v1226_v10, %v917_v2 }
 0x2f4   :  { %v2223_v19 = vpop.f32.mrf.mxu1 }
 0x2f5   :  { %1621 = vmatmul.mubr.bf16.vlgmr.msra.gmra.mxu0 %v2685_v15  ;;  %1662 = vmatmul.mubr.bf16.vlgmr.msra.gmra.mxu1 %v2685_v15 }
 0x2f6   :  { %1671 = vmatpush1.bf16.msra.mxu0 %v2101_v1  ;;  %1712 = vmatpush1.bf16.msra.mxu1 %v2103_v3  ;;  %v1169_v1 = vld [vmem:[#allocation10 + $0x38] sm:$0xff]  ;;  %v2053_v3 = vcombine.low %v1172_v52, %v1176_v53 }
 0x2f7   :  { %1672 = vmatprep.subr.bf16.mxu0 %v2094_v16  ;;  %1713 = vmatprep.subr.bf16.mxu1 %v2096_v17  ;;  %v2048_v6 = vcombine.high %v1165_v63, %v1169_v1  ;;  %v2047_v8 = vcombine.low %v1165_v63, %v1169_v1  ;;  %v1243_v16 = vrot.slane %v1226_v10, %v1242_v11 }
 0x2f8   :  { %1702 = vmatprep.mubr.bf16.mxu0 %v2549_v56  ;;  %1743 = vmatprep.mubr.bf16.mxu1 %v2549_v56  ;;  %v2072_v56 = vcombine.high %v1189_v42, %v1193_v43 }
 0x2fa   :  { %1673 = vmatpush1.bf16.msra.mxu0 %v2093_v23  ;;  %1714 = vmatpush1.bf16.msra.mxu1 %v2095_v24 }
 0x2fb   :  { %1674 = vmatprep.subr.bf16.mxu0 %v2086_v25  ;;  %1715 = vmatprep.subr.bf16.mxu1 %v2088_v26 }
 0x2fe   :  { %1675 = vmatpush1.bf16.msra.mxu0 %v2085_v33  ;;  %1716 = vmatpush1.bf16.msra.mxu1 %v2087_v34 }
 0x2ff   :  { %1676 = vmatprep.subr.bf16.mxu0 %v2078_v36  ;;  %1717 = vmatprep.subr.bf16.mxu1 %v2080_v38 }
 0x302   :  { %1677 = vmatpush1.bf16.msra.mxu0 %v2077_v44  ;;  %1718 = vmatpush1.bf16.msra.mxu1 %v2079_v31 }
 0x303   :  { %1678 = vmatprep.subr.bf16.mxu0 %v2070_v35  ;;  %1719 = vmatprep.subr.bf16.mxu1 %v2072_v56  ;;  %v1246_v56 = vsub.s32 4, %v2638_v32 }
 0x305   :  { %v1247_v47 = vrot.slane %v1226_v10, %v1246_v56 }
 0x306   :  { %1679 = vmatpush1.bf16.msra.mxu0 %v2069_v48  ;;  %1720 = vmatpush1.bf16.msra.mxu1 %v2071_v49  ;;  %v1255_v48 = vrot.slane %v1226_v10, %v1254_v39  ;;  %v1251_v49 = vrot.slane %v1226_v10, %v1250_v45 }
 0x307   :  { %1680 = vmatprep.subr.bf16.mxu0 %v2062_v50  ;;  %1721 = vmatprep.subr.bf16.mxu1 %v2064_v51  ;;  %v1259_v50 = vrot.slane %v1226_v10, %v1258_v46 }
 0x30a   :  { %1681 = vmatpush1.bf16.msra.mxu0 %v2061_v57  ;;  %1722 = vmatpush1.bf16.msra.mxu1 %v2063_v58 }
 0x30b   :  { %1682 = vmatprep.subr.bf16.mxu0 %v2054_v59  ;;  %1723 = vmatprep.subr.bf16.mxu1 %v2056_v60 }
 0x30e   :  { %1683 = vmatpush1.bf16.msra.mxu0 %v2053_v3  ;;  %1724 = vmatpush1.bf16.msra.mxu1 %v2055_v4 }
 0x30f   :  { %1684 = vmatprep.subr.bf16.mxu0 %v2046_v5  ;;  %1725 = vmatprep.subr.bf16.mxu1 %v2048_v6 }
 0x312   :  { %1685 = vmatpush1.bf16.msra.mxu0 %v2045_v7  ;;  %1726 = vmatpush1.bf16.msra.mxu1 %v2047_v8 }
 0x315   :  { %1703 = vmatmul.mubr.bf16.vlgmr.msra.gmra.mxu0 %v2685_v15  ;;  %1744 = vmatmul.mubr.bf16.vlgmr.msra.gmra.mxu1 %v2685_v15 }
 0x3b5   :  { %v1622_v17 = vpop.f32.mrf.mxu0  ;;  %v1663_v18 = vpop.f32.mrf.mxu1 }
 0x3b6   :  { %v1623_v19 = vadd.f32 %v1622_v17, %v1231_v12  ;;  %v1664_v15 = vadd.f32 %v1663_v18, %v1239_v13 }
 0x3b7   :  { %v1624_v20 = vpop.f32.mrf.mxu0  ;;  %v1665_v21 = vpop.f32.mrf.mxu1 }
 0x3b8   :  { %v1752_v22 = vsub.f32 0.0, %v1623_v19  ;;  %v1754_v23 = vsub.f32 0.0, %v1664_v15  ;;  %v1625_v24 = vadd.f32 %v1624_v20, %v1235_v14  ;;  %v1666_v25 = vadd.f32 %v1665_v21, %v1243_v16 }
 0x3b9   :  { %v1626_v26 = vpop.f32.mrf.mxu0  ;;  %v1667_v27 = vpop.f32.mrf.mxu1 }
 0x3ba   :  { %v1760_v28 = vmul.f32 1.442695, %v1752_v22  ;;  %v1764_v29 = vmul.f32 1.442695, %v1754_v23  ;;  %v1753_v0 = vsub.f32 0.0, %v1625_v24  ;;  %v1755_v30 = vsub.f32 0.0, %v1666_v25 }
 0x3bb   :  { %v1627_v33 = vpop.f32.mrf.mxu0  ;;  %v1668_v34 = vpop.f32.mrf.mxu1 }
 0x3bc   :  { %2353 = vpow2.f32 %v1760_v28  ;;  %v1762_v2 = vmul.f32 1.442695, %v1753_v0  ;;  %v1766_v36 = vmul.f32 1.442695, %v1755_v30 }
 0x3bd   :  { %2355 = vpow2.f32 %v1764_v29 }
 0x3be   :  { %2357 = vpow2.f32 %v1762_v2 }
 0x3bf   :  { %2359 = vpow2.f32 %v1766_v36 }
 0x3c9   :  { %v2354_v38 = vpop.eup %2353 }
 0x3ca   :  { %v2356_v40 = vpop.eup %2355  ;;  %v1776_v41 = vadd.f32 1.0, %v2354_v38 }
 0x3cb   :  { %v2358_v42 = vpop.eup %2357  ;;  %v1778_v43 = vadd.f32 1.0, %v2356_v40 }
 0x3cc   :  { %v2360_v44 = vpop.eup %2359  ;;  %2361 = vrcp.f32 %v1776_v41  ;;  %v1777_v31 = vadd.f32 1.0, %v2358_v42 }
 0x3cd   :  { %2363 = vrcp.f32 %v1778_v43  ;;  %v1779_v35 = vadd.f32 1.0, %v2360_v44 }
 0x3ce   :  { %2365 = vrcp.f32 %v1777_v31 }
 0x3cf   :  { %2367 = vrcp.f32 %v1779_v35 }
 0x3d5   :  { %v1704_v51 = vpop.f32.mrf.mxu0  ;;  %v1745_v52 = vpop.f32.mrf.mxu1 }
 0x3d6   :  { %v1705_v53 = vadd.f32 %v1704_v51, %v1247_v47  ;;  %v1746_v54 = vadd.f32 %v1745_v52, %v1255_v48 }
 0x3d7   :  { %v1706_v55 = vpop.f32.mrf.mxu0  ;;  %v1747_v57 = vpop.f32.mrf.mxu1 }
 0x3d8   :  { %v1756_v58 = vsub.f32 0.0, %v1705_v53  ;;  %v1758_v59 = vsub.f32 0.0, %v1746_v54  ;;  %v1707_v60 = vadd.f32 %v1706_v55, %v1251_v49  ;;  %v1748_v61 = vadd.f32 %v1747_v57, %v1259_v50 }
 0x3d9   :  { %v2362_v62 = vpop.eup %2361  ;;  %v1708_v63 = vpop.f32.mrf.mxu0 }
 0x3da   :  { %v1749_v1 = vpop.f32.mrf.mxu1  ;;  %v2364_v3 = vpop.eup %2363  ;;  %v1768_v4 = vmul.f32 1.442695, %v1756_v58  ;;  %v1772_v32 = vmul.f32 1.442695, %v1758_v59  ;;  %v1757_v5 = vsub.f32 0.0, %v1707_v60  ;;  %v1759_v6 = vsub.f32 0.0, %v1748_v61 }
 0x3db   :  { %v2366_v7 = vpop.eup %2365  ;;  %v1709_v8 = vpop.f32.mrf.mxu0 }
 0x3dc   :  { %v1750_v9 = vpop.f32.mrf.mxu1  ;;  %v2368_v10 = vpop.eup %2367  ;;  %v1800_v11 = vcombine.low %v2362_v62, %v2366_v7  ;;  %v1801_v12 = vcombine.high %v2362_v62, %v2366_v7  ;;  %2369 = vpow2.f32 %v1768_v4  ;;  %v1770_v13 = vmul.f32 1.442695, %v1757_v5 }
 0x3dd   :  { %v1802_v14 = vcombine.low %v2364_v3, %v2368_v10  ;;  %v1803_v16 = vcombine.high %v2364_v3, %v2368_v10  ;;  %2371 = vpow2.f32 %v1772_v32  ;;  %v1774_v17 = vmul.f32 1.442695, %v1759_v6 }
 0x3de   :  { %v1810_v18 = vrot.slane %v1800_v11, %v2641_v37  ;;  %v1817_v19 = vrot.slane %v1801_v12, %v2641_v37  ;;  %2373 = vpow2.f32 %v1770_v13 }
 0x3df   :  { %v1824_v15 = vrot.slane %v1802_v14, %v2641_v37  ;;  %v1831_v20 = vrot.slane %v1803_v16, %v2641_v37  ;;  %2375 = vpow2.f32 %v1774_v17 }
 0x3e1   :  { %v1832_v21 = vcombine.low %v1810_v18, %v1824_v15  ;;  %v1833_v22 = vcombine.high %v1810_v18, %v1824_v15  ;;  %v1834_v23 = vcombine.low %v1817_v19, %v1831_v20  ;;  %v1835_v24 = vcombine.high %v1817_v19, %v1831_v20 }
 0x3e3   :  { %1880 = vst [vmem:[#allocation11] sm:$0xff] %v1832_v21  ;;  %1882 = vst [vmem:[#allocation11 + $0x10] sm:$0xff] %v1833_v22 }
 0x3e4   :  { %1884 = vst [vmem:[#allocation11 + $0x20] sm:$0xff] %v1834_v23  ;;  %1886 = vst [vmem:[#allocation11 + $0x30] sm:$0xff] %v1835_v24 }
 0x3e9   :  { %v2370_v25 = vpop.eup %2369 }
 0x3ea   :  { %v2372_v26 = vpop.eup %2371  ;;  %v1780_v27 = vadd.f32 1.0, %v2370_v25 }
 0x3eb   :  { %v2374_v28 = vpop.eup %2373  ;;  %v1782_v29 = vadd.f32 1.0, %v2372_v26 }
 0x3ec   :  { %v2376_v0 = vpop.eup %2375  ;;  %2377 = vrcp.f32 %v1780_v27  ;;  %v1781_v30 = vadd.f32 1.0, %v2374_v28 }
 0x3ed   :  { %2379 = vrcp.f32 %v1782_v29  ;;  %v1783_v33 = vadd.f32 1.0, %v2376_v0 }
 0x3ee   :  { %2381 = vrcp.f32 %v1781_v30 }
 0x3ef   :  { %2383 = vrcp.f32 %v1783_v33 }
 0x3f9   :  { %v2378_v34 = vpop.eup %2377 }
 0x3fa   :  { %v2380_v2 = vpop.eup %2379 }
 0x3fb   :  { %v2382_v36 = vpop.eup %2381 }
 0x3fc   :  { %v2384_v38 = vpop.eup %2383  ;;  %v1836_v40 = vcombine.low %v2378_v34, %v2382_v36  ;;  %v1837_v41 = vcombine.high %v2378_v34, %v2382_v36 }
 0x3fd   :  { %v1838_v42 = vcombine.low %v2380_v2, %v2384_v38  ;;  %v1839_v43 = vcombine.high %v2380_v2, %v2384_v38 }
 0x3fe   :  { %v1846_v44 = vrot.slane %v1836_v40, %v2641_v37  ;;  %v1853_v31 = vrot.slane %v1837_v41, %v2641_v37 }
 0x3ff   :  { %v1860_v35 = vrot.slane %v1838_v42, %v2641_v37  ;;  %v1867_v56 = vrot.slane %v1839_v43, %v2641_v37 }
 0x401   :  { %v1868_v39 = vcombine.low %v1846_v44, %v1860_v35  ;;  %v1869_v45 = vcombine.high %v1846_v44, %v1860_v35  ;;  %v1870_v46 = vcombine.low %v1853_v31, %v1867_v56  ;;  %v1871_v47 = vcombine.high %v1853_v31, %v1867_v56 }
 0x403   :  { %1881 = vst [vmem:[#allocation11 + $0x8] sm:$0xff] %v1868_v39  ;;  %1883 = vst [vmem:[#allocation11 + $0x18] sm:$0xff] %v1869_v45 }
 0x404   :  { %1885 = vst [vmem:[#allocation11 + $0x28] sm:$0xff] %v1870_v46  ;;  %1887 = vst [vmem:[#allocation11 + $0x38] sm:$0xff] %v1871_v47 }
 0x405   :  { %1920 = vsyncadd [#allocation4], 768  ;;  %s2552_s9 = smov [#allocation11]  }
 0x406   :  { %s1921_s17 = sshll.u32 %s2552_s9, 4  ;;  %s1922_s17 = int_to_ptr.vmem [resolvable:$true] %s1921_s17 }
 0x407   :  { %s2485_s6 = scalar_lea.vmem %s1922_s17, 256  ;;  %s2489_s18 = scalar_lea.vmem %s1922_s17, 1024 }
 0x408   :  { %p2486_p11 = scmp.ne.s32.totalorder %s1922_s17, %s2485_s6  ;;  %p2490_p12 = scmp.lt.s32.totalorder %s1922_s17, %s1922_s17 }
 0x409   :  { %p2491_p13 = scmp.lt.s32.totalorder %s2489_s18, %s2485_s6 }
 0x40b   :  { %p2492_p0 = por %p2491_p13, %p2490_p12 }
 0x40d   :  { %p2493_p1 = pnand %p2492_p0, %p2486_p11 }
 0x40f   :  { %2496 = shalt.err (!%p2493_p1)
}
 0x410   :  { %1927 = dma.vmem_to_hbm [thread:$0]  %s1922_s17, 256, %s2736_s10, [#allocation4], %s2540_s13, %s2540_s13, %s2541_s14  }
 0x411   :  { %1932 = vsyncadd [#allocation13], 192  ;;  %s2553_s23 = smov [#allocation12]  }
 0x412   :  { %s1933_s24 = sshll.u32 %s2553_s23, 4  ;;  %s1934_s24 = int_to_ptr.vmem [resolvable:$true] %s1933_s24 }
 0x413   :  { %s2505_s25 = scalar_lea.vmem %s1934_s24, 64  ;;  %s2509_s26 = scalar_lea.vmem %s1934_s24, 256 }
 0x414   :  { %p2506_p2 = scmp.ne.s32.totalorder %s1934_s24, %s2505_s25  ;;  %p2510_p3 = scmp.lt.s32.totalorder %s1934_s24, %s1934_s24 }
 0x415   :  { %p2511_p4 = scmp.lt.s32.totalorder %s2509_s26, %s2505_s25 }
 0x417   :  { %p2512_p5 = por %p2511_p4, %p2510_p3 }
 0x419   :  { %p2513_p6 = pnand %p2512_p5, %p2506_p2 }
 0x41b   :  { %2516 = shalt.err (!%p2513_p6)
}
 0x41c   :  { %1939 = dma.vmem_to_hbm [thread:$0]  %s1934_s24, 64, %s2737_s11, [#allocation13], %s2536_s20, %s2536_s20, %s2537_s21  }
 0x41d   :  { %2531 = dma.done.wait [#allocation4], 1024  }
 0x41e   :  { %2532 = vsyncadd [#allocation4], 4294966272 }
 0x41f   :  { %2533 = dma.done.wait [#allocation13], 256  }
 0x420   :  { %2534 = vsyncadd [#allocation13], 4294967040 }
 0x421   :  { %1946 = vsyncpa [#allocation3], 1 }
 0x422   :  { %1947 = vsyncpa [#allocation6], 1 }
 0x423   :  { %1948 = vsyncpa [#allocation9], 1 }
 0x424   :  { %1949 = vsyncpa [#allocation4], 1 }
 0x425   :  { %1950 = vsyncpa [#allocation13], 1 }

</bundles_post_ra>
